<compile_context>
chip_gen: v6e
topology: v6e:2x2x1
jax: 0.10.0
libtpu: 0.0.40
codegen_flags: <defaults>
</compile_context>

<pallas_src>
import functools

import jax
import jax.numpy as jnp
from jax.experimental import pallas as pl
from jax.experimental.pallas import tpu as pltpu

_ENTROPY_EPS = 1e-9


def _round_up(v, m):
    return ((v + m - 1) // m) * m


def _learned_dropout_kernel(x_ref, a_ref, b_ref, o_ref, *stat_refs,
                            d_true, use_sigmoid, training, use_canonical):
    x = x_ref[...].astype(jnp.float32)            # (tm, Dp)
    a = a_ref[...].astype(jnp.float32)            # (1, Dp) broadcast over rows
    b = b_ref[...].astype(jnp.float32)            # (1, Dp)

    mask = 0.5 * jnp.cos(a * x + b) + 0.5         # (tm, Dp), values in [0, 1]

    if training:
        ent_ref, l1_ref = stat_refs
        tm, d_pad = mask.shape
        if use_canonical:
            ent_terms = mask * (-jnp.log2(mask + _ENTROPY_EPS))
        else:
            # Clamp before adding eps so the log argument can never reach 0 even if
            # mask == 1.0 exactly (padded lanes) or XLA reassociates the constant adds.
            ent_terms = (mask - 1.0) * jnp.log2(
                jnp.maximum(1.0 - mask, 0.0) + _ENTROPY_EPS)
        l1_terms = mask                            # mask >= 0, so |mask| == mask
        if d_pad != d_true:
            # Drop padded lanes from the per-row statistics (select also blocks NaNs).
            lane_valid = jax.lax.broadcasted_iota(jnp.int32, (1, d_pad), 1) < d_true
            ent_terms = jnp.where(lane_valid, ent_terms, 0.0)
            l1_terms = jnp.where(lane_valid, l1_terms, 0.0)
        inv_d = jnp.float32(1.0 / d_true)
        # Lane-dense stat stores: (tm,) row-sums written as a (1, 1, tm) row.
        ent_row = (jnp.sum(ent_terms, axis=-1) * inv_d).reshape(1, 1, tm)
        l1_row = (jnp.sum(l1_terms, axis=-1) * inv_d).reshape(1, 1, tm)
        ent_ref[...] = ent_row.astype(ent_ref.dtype)
        l1_ref[...] = l1_row.astype(l1_ref.dtype)

    if use_sigmoid:
        # sigmoid(60*m - 30) == 0.5 * tanh(30*m - 15) + 0.5 : one EUP op, no divide.
        mask = 0.5 * jnp.tanh(mask * 30.0 - 15.0) + 0.5

    o_ref[...] = (x * mask).astype(o_ref.dtype)


@functools.partial(
    jax.jit,
    static_argnames=("training", "use_sigmoid_on_dropout_mask",
                     "use_canonical_entropy", "block_rows"))
def learned_dropout(x, A, B, *, training=False,
                    use_sigmoid_on_dropout_mask=False,
                    use_canonical_entropy=True, block_rows=None):
    """LearnedDropout forward.

    x: (..., D); A, B: (D,) learned parameters.
    Returns y (same shape/dtype as x). If training=True, also returns
    (dropout_entropy, dropout_l1_norm), each of shape (prod(x.shape[:-1]),).
    """
    orig_shape = x.shape
    D = orig_shape[-1]
    x2 = x.reshape(-1, D)
    R = x2.shape[0]
    itemsize = jnp.dtype(x.dtype).itemsize

    # Lane-dense feature dim (only pad when D is not a multiple of 128) and
    # dtype-aware sublane packing (8 rows f32, 16 bf16, 32 int8).
    Dp = _round_up(D, 128)
    pack = max(8, 32 // itemsize)

    if block_rows is None:
        # ~4 MiB of f32 intermediates per block sits at the HBM-roofline knee;
        # 2 in + 2 out pipeline buffers + f32 temps stays well under v7x's 64 MiB VMEM.
        rows_cap = max(pack, ((4 << 20) // (Dp * 4)) // pack * pack)
        # Keep the grid >= 2 steps when possible so the "parallel" axis actually
        # splits rows across v7x's two TensorCores.
        target = _round_up(pl.cdiv(R, 2), pack) if R > pack else pack
        block_rows = min(rows_cap, target)
    block_rows = max(pack, (block_rows // pack) * pack)

    num_blocks = pl.cdiv(R, block_rows)
    grid = (num_blocks,)

    a2 = A.reshape(1, D)
    b2 = B.reshape(1, D)
    if Dp != D:
        # Lane padding only (rare: D % 128 != 0). Rows are never padded.
        x2 = jnp.pad(x2, ((0, 0), (0, Dp - D)))
        a2 = jnp.pad(a2, ((0, 0), (0, Dp - D)))
        b2 = jnp.pad(b2, ((0, 0), (0, Dp - D)))

    row_spec = pl.BlockSpec((block_rows, Dp), lambda i: (i, 0))
    par_spec = pl.BlockSpec((1, Dp), lambda i: (0, 0))

    out_shape = jax.ShapeDtypeStruct((R, Dp), x.dtype)
    out_specs = row_spec
    if training:
        stat_shape = jax.ShapeDtypeStruct((num_blocks, 1, block_rows), jnp.float32)
        stat_spec = pl.BlockSpec((1, 1, block_rows), lambda i: (i, 0, 0))
        out_shape = (out_shape, stat_shape, stat_shape)
        out_specs = (row_spec, stat_spec, stat_spec)

    n_trans = 1 + (1 if training else 0) + (1 if use_sigmoid_on_dropout_mask else 0)
    cost = pl.CostEstimate(
        flops=int((8 if training else 5) * R * Dp),
        transcendentals=int(n_trans * R * Dp),
        bytes_accessed=int(2 * R * Dp * itemsize + 2 * Dp * 4
                           + (2 * R * 4 if training else 0)),
    )

    # VMEM budget: double-buffered x in / y out in the I/O dtype plus f32 intermediates
    # (mask, entropy/l1 terms, upcast) for one block, A/B, stats, and slack.
    x_blk = block_rows * Dp * itemsize
    f32_blk = block_rows * Dp * 4
    stat_blk = 4 * block_rows * 4 if training else 0
    vmem_need = 4 * x_blk + 4 * f32_blk + 4 * Dp * 4 + stat_blk + (2 << 20)
    vmem_limit = int(min(max(vmem_need, 16 << 20), 48 << 20))

    kernel = functools.partial(
        _learned_dropout_kernel, d_true=D,
        use_sigmoid=use_sigmoid_on_dropout_mask,
        training=training, use_canonical=use_canonical_entropy)

    result = pl.pallas_call(
        kernel,
        out_shape=out_shape,
        grid_spec=pltpu.PrefetchScalarGridSpec(
            num_scalar_prefetch=0,
            grid=grid,
            in_specs=[row_spec, par_spec, par_spec],
            out_specs=out_specs,
        ),
        compiler_params=pltpu.CompilerParams(
            dimension_semantics=("parallel",),   # shard rows across v7x's 2 TCs
            vmem_limit_bytes=vmem_limit,
        ),
        cost_estimate=cost,
    )(x2, a2, b2)

    if training:
        y, ent, l1 = result
        ent = ent.reshape(-1)[:R]
        l1 = l1.reshape(-1)[:R]
    else:
        y = result
    if Dp != D:
        y = y[:, :D]
    y = y.reshape(orig_shape)
    if training:
        return y, ent, l1
    return y


if __name__ == "__main__":
    key = jax.random.PRNGKey(0)
    kx, ka, kb, kx2, ka2, kb2, kx3 = jax.random.split(key, 7)

    # --- main check: lane-dense hidden dim, training stats path, 2-step grid ---
    Bsz, S, D = 2, 8, 128
    x = jax.random.normal(kx, (Bsz, S, D), dtype=jnp.float32)
    # Mimic nn.Parameter(torch.normal(init_mean, init_std, size=(D,))).
    A = 1.0 + 0.02 * jax.random.normal(ka, (D,), dtype=jnp.float32)
    Bp = 0.0 + 0.02 * jax.random.normal(kb, (D,), dtype=jnp.float32)

    y, ent, l1 = learned_dropout(x, A, Bp, training=True)
    jax.block_until_ready((y, ent, l1))

    mask = 0.5 * jnp.cos(A * x + Bp) + 0.5
    ref_y = x * mask
    ref_ent = jnp.mean(mask * -jnp.log2(mask + 1e-9), axis=-1).reshape(-1)
    ref_l1 = (jnp.sum(jnp.abs(mask), axis=-1) / D).reshape(-1)
    assert jnp.allclose(y, ref_y, atol=1e-5, rtol=1e-5), "output mismatch"
    assert jnp.allclose(ent, ref_ent, atol=1e-5, rtol=1e-5), "entropy mismatch"
    assert jnp.allclose(l1, ref_l1, atol=1e-5, rtol=1e-5), "l1 norm mismatch"

    # eval path (no stats) and sigmoid-on-mask variant (tanh form in-kernel)
    y_eval = learned_dropout(x, A, Bp, training=False)
    assert jnp.allclose(jax.block_until_ready(y_eval), ref_y, atol=1e-5, rtol=1e-5)
    y_sig = learned_dropout(x, A, Bp, use_sigmoid_on_dropout_mask=True)
    ref_sig = x * (1.0 / (1.0 + jnp.exp(-(mask * 60.0 - 30.0))))
    assert jnp.allclose(jax.block_until_ready(y_sig), ref_sig, atol=1e-5, rtol=1e-5)

    # --- small non-128 hidden dim: exercises lane padding + stat masking,
    #     plus the alternate entropy form (previous NaN failure case) ---
    Bs, Ss, Ds = 2, 4, 32
    xs = jax.random.normal(kx2, (Bs, Ss, Ds), dtype=jnp.float32)
    As = 1.0 + 0.02 * jax.random.normal(ka2, (Ds,), dtype=jnp.float32)
    Bs_p = 0.0 + 0.02 * jax.random.normal(kb2, (Ds,), dtype=jnp.float32)
    ys, ents, l1s = learned_dropout(xs, As, Bs_p, training=True,
                                    use_canonical_entropy=False)
    jax.block_until_ready((ys, ents, l1s))
    masks = 0.5 * jnp.cos(As * xs + Bs_p) + 0.5
    ref_ys = xs * masks
    ref_ents = jnp.mean((masks - 1.0) * jnp.log2(-masks + 1.0 + 1e-9),
                        axis=-1).reshape(-1)
    ref_l1s = (jnp.sum(jnp.abs(masks), axis=-1) / Ds).reshape(-1)
    assert jnp.allclose(ys, ref_ys, atol=1e-5, rtol=1e-5), "padded output mismatch"
    assert jnp.allclose(ents, ref_ents, atol=1e-5, rtol=1e-5), "padded entropy mismatch"
    assert jnp.allclose(l1s, ref_l1s, atol=1e-5, rtol=1e-5), "padded l1 mismatch"

    # --- ragged row count: exercises the partial last block (no row padding) ---
    Br, Sr = 3, 5                                  # R = 15, not a block multiple
    xr = jax.random.normal(kx3, (Br, Sr, D), dtype=jnp.float32)
    yr, entr, l1r = learned_dropout(xr, A, Bp, training=True)
    jax.block_until_ready((yr, entr, l1r))
    maskr = 0.5 * jnp.cos(A * xr + Bp) + 0.5
    assert jnp.allclose(yr, xr * maskr, atol=1e-5, rtol=1e-5), "ragged output mismatch"
    ref_entr = jnp.mean(maskr * -jnp.log2(maskr + 1e-9), axis=-1).reshape(-1)
    ref_l1r = (jnp.sum(jnp.abs(maskr), axis=-1) / D).reshape(-1)
    assert jnp.allclose(entr, ref_entr, atol=1e-5, rtol=1e-5), "ragged entropy mismatch"
    assert jnp.allclose(l1r, ref_l1r, atol=1e-5, rtol=1e-5), "ragged l1 mismatch"

    print("KERNEL_OK")
</pallas_src>

<mosaic_0001>
module attributes {stable_mosaic.version = 11 : i64} {
  func.func @_learned_dropout_kernel(%arg0: i32, %arg1: memref<8x128xf32, #tpu.memory_space<vmem>>, %arg2: memref<1x128xf32, #tpu.memory_space<vmem>>, %arg3: memref<1x128xf32, #tpu.memory_space<vmem>>, %arg4: memref<8x128xf32, #tpu.memory_space<vmem>>, %arg5: memref<1x1x8xf32, #tpu.memory_space<vmem>>, %arg6: memref<1x1x8xf32, #tpu.memory_space<vmem>>) attributes {dimension_semantics = [#tpu.dimension_semantics<parallel>], iteration_bounds = array<i64: 2>, scalar_prefetch = 0 : i64, scratch_operands = 0 : i64, tpu.core_type = #tpu.core_type<tc>, window_params = [{transform_indices = @transform_0, window_bounds = array<i64: 8, 128>}, {pipeline_mode = #tpu.pipeline_mode<synchronous>, transform_indices = @transform_1, window_bounds = array<i64: 1, 128>}, {pipeline_mode = #tpu.pipeline_mode<synchronous>, transform_indices = @transform_2, window_bounds = array<i64: 1, 128>}, {transform_indices = @transform_3, window_bounds = array<i64: 8, 128>}, {transform_indices = @transform_4, window_bounds = array<i64: 1, 1, 8>}, {transform_indices = @transform_5, window_bounds = array<i64: 1, 1, 8>}]} {
    %c0 = arith.constant 0 : index
    %c0_0 = arith.constant 0 : index
    %0 = vector.load %arg1[%c0, %c0_0] : memref<8x128xf32, #tpu.memory_space<vmem>>, vector<8x128xf32>
    %c0_1 = arith.constant 0 : index
    %c0_2 = arith.constant 0 : index
    %1 = vector.load %arg2[%c0_1, %c0_2] : memref<1x128xf32, #tpu.memory_space<vmem>>, vector<1x128xf32>
    %c0_3 = arith.constant 0 : index
    %c0_4 = arith.constant 0 : index
    %2 = vector.load %arg3[%c0_3, %c0_4] : memref<1x128xf32, #tpu.memory_space<vmem>>, vector<1x128xf32>
    %3 = vector.broadcast %1 : vector<1x128xf32> to vector<8x128xf32>
    %4 = arith.mulf %3, %0 : vector<8x128xf32>
    %5 = vector.broadcast %2 : vector<1x128xf32> to vector<8x128xf32>
    %6 = arith.addf %4, %5 : vector<8x128xf32>
    %7 = math.cos %6 : vector<8x128xf32>
    %cst = arith.constant 5.000000e-01 : f32
    %8 = vector.broadcast %cst : f32 to vector<8x128xf32>
    %9 = arith.mulf %8, %7 : vector<8x128xf32>
    %cst_5 = arith.constant 5.000000e-01 : f32
    %10 = vector.broadcast %cst_5 : f32 to vector<8x128xf32>
    %11 = arith.addf %9, %10 : vector<8x128xf32>
    %cst_6 = arith.constant 9.99999971E-10 : f32
    %12 = vector.broadcast %cst_6 : f32 to vector<8x128xf32>
    %13 = arith.addf %11, %12 : vector<8x128xf32>
    %14 = math.log %13 : vector<8x128xf32>
    %cst_7 = arith.constant 2.000000e+00 : f32
    %15 = math.log %cst_7 : f32
    %16 = vector.broadcast %15 : f32 to vector<8x128xf32>
    %17 = arith.divf %14, %16 : vector<8x128xf32>
    %cst_8 = arith.constant 0.000000e+00 : f32
    %18 = vector.broadcast %cst_8 : f32 to vector<8x128xf32>
    %19 = arith.subf %18, %17 : vector<8x128xf32>
    %20 = arith.mulf %11, %19 : vector<8x128xf32>
    %cst_9 = arith.constant dense<0.000000e+00> : vector<8xf32>
    %21 = vector.multi_reduction <add>, %20, %cst_9 [1] : vector<8x128xf32> to vector<8xf32>
    %cst_10 = arith.constant 7.812500e-03 : f32
    %22 = vector.broadcast %cst_10 : f32 to vector<8xf32>
    %23 = arith.mulf %21, %22 : vector<8xf32>
    %24 = vector.shape_cast %23 : vector<8xf32> to vector<1x1x8xf32>
    %cst_11 = arith.constant dense<0.000000e+00> : vector<8xf32>
    %25 = vector.multi_reduction <add>, %11, %cst_11 [1] : vector<8x128xf32> to vector<8xf32>
    %cst_12 = arith.constant 7.812500e-03 : f32
    %26 = vector.broadcast %cst_12 : f32 to vector<8xf32>
    %27 = arith.mulf %25, %26 : vector<8xf32>
    %28 = vector.shape_cast %27 : vector<8xf32> to vector<1x1x8xf32>
    %c0_13 = arith.constant 0 : index
    %c0_14 = arith.constant 0 : index
    %c0_15 = arith.constant 0 : index
    %29 = vector.load %arg5[%c0_13, %c0_14, %c0_15] : memref<1x1x8xf32, #tpu.memory_space<vmem>>, vector<1x1x8xf32>
    tpu.vector_store %arg5[%c0_13, %c0_14, %c0_15], %24 {strides = array<i32>} : memref<1x1x8xf32, #tpu.memory_space<vmem>>, vector<1x1x8xf32>,
    %c0_16 = arith.constant 0 : index
    %c0_17 = arith.constant 0 : index
    %c0_18 = arith.constant 0 : index
    %30 = vector.load %arg6[%c0_16, %c0_17, %c0_18] : memref<1x1x8xf32, #tpu.memory_space<vmem>>, vector<1x1x8xf32>
    tpu.vector_store %arg6[%c0_16, %c0_17, %c0_18], %28 {strides = array<i32>} : memref<1x1x8xf32, #tpu.memory_space<vmem>>, vector<1x1x8xf32>,
    %31 = arith.mulf %0, %11 : vector<8x128xf32>
    %c0_19 = arith.constant 0 : index
    %c0_20 = arith.constant 0 : index
    %32 = vector.load %arg4[%c0_19, %c0_20] : memref<8x128xf32, #tpu.memory_space<vmem>>, vector<8x128xf32>
    tpu.vector_store %arg4[%c0_19, %c0_20], %31 {strides = array<i32>} : memref<8x128xf32, #tpu.memory_space<vmem>>, vector<8x128xf32>,
    return
  }
  func.func @transform_0(%arg0: i32) -> (i32, i32) {
    %c0_i32 = arith.constant 0 : i32
    %c0_i32_0 = arith.constant 0 : i32
    return %arg0, %c0_i32 : i32, i32
  }
  func.func @transform_1(%arg0: i32) -> (i32, i32) {
    %c0_i32 = arith.constant 0 : i32
    %c0_i32_0 = arith.constant 0 : i32
    %c0_i32_1 = arith.constant 0 : i32
    return %c0_i32, %c0_i32_0 : i32, i32
  }
  func.func @transform_2(%arg0: i32) -> (i32, i32) {
    %c0_i32 = arith.constant 0 : i32
    %c0_i32_0 = arith.constant 0 : i32
    %c0_i32_1 = arith.constant 0 : i32
    return %c0_i32, %c0_i32_0 : i32, i32
  }
  func.func @transform_3(%arg0: i32) -> (i32, i32) {
    %c0_i32 = arith.constant 0 : i32
    %c0_i32_0 = arith.constant 0 : i32
    return %arg0, %c0_i32 : i32, i32
  }
  func.func @transform_4(%arg0: i32) -> (i32, i32, i32) {
    %c0_i32 = arith.constant 0 : i32
    %c0_i32_0 = arith.constant 0 : i32
    %c0_i32_1 = arith.constant 0 : i32
    return %arg0, %c0_i32, %c0_i32_0 : i32, i32, i32
  }
  func.func @transform_5(%arg0: i32) -> (i32, i32, i32) {
    %c0_i32 = arith.constant 0 : i32
    %c0_i32_0 = arith.constant 0 : i32
    %c0_i32_1 = arith.constant 0 : i32
    return %arg0, %c0_i32, %c0_i32_0 : i32, i32, i32
  }
}

</mosaic_0001>

<bundles_post_ra>
// kernel: learned_dropout.1
= control target key start
LH: loop header
LB: loop body
LE: loop exit
PB: predicated region body
PF: predicated region fallthrough
CT: control target
= control target key end

     0   :  { %11 = vsyncpa [#allocation3], 0  ;;  %s941_s0 = inlined_call_operand.hbm [shape: f32[16,128], index: 0, kind: input, shape index: {}]   ;;  %s942_s1 = inlined_call_operand.vmem [shape: f32[1,128], index: 1, kind: input, shape index: {}]   ;;  %s943_s2 = inlined_call_operand.vmem [shape: f32[1,128], index: 2, kind: input, shape index: {}]   ;;  %s944_s3 = inlined_call_operand.hbm [shape: f32[16,128], index: 3, kind: output, shape index: {0}]   ;;  %s945_s4 = inlined_call_operand.vmem [shape: f32[2,1,8], index: 4, kind: output, shape index: {1}]   ;;  %s946_s5 = inlined_call_operand.vmem [shape: f32[2,1,8], index: 5, kind: output, shape index: {2}]  }
   0x1   :  { %13 = vsyncpa [#allocation3 + $0x1], 0 }
   0x2   :  { %14 = vsyncpa [#allocation4], 0 }
   0x3   :  { %16 = vsyncpa [#allocation4 + $0x1], 0  ;;  %s757_s18 = smov 0   ;;  %s759_s19 = smov 0  }
   0x4   :  { %s761_s20 = smov 0   ;;  %s763_s21 = smov 0  }
   0x5 LB: > { %s778_s22 = sadd.s32 4294967295, %s717_s21   ;;  %s545_s23 = sadd.s32 4294967294, %s717_s21   ;;  %s717_s21 = sphi %s763_s21, %s963_s21   ;;  %s713_s20 = sphi %s761_s20, %s962_s20   ;;  %s709_s19 = sphi %s759_s19, %s961_s19   ;;  %s705_s18 = sphi %s757_s18, %s960_s18  }
   0x6   : > { %s782_s24 = sadd.s32 1, %s717_s21   ;;  %s29_s25 = sadd.s32 1, %s713_s20 }
   0x7   : > { %s26_s26 = ssub.s32 %s717_s21, %s782_s24  ;;  %p36_p0 = scmp.ne.s32.totalorder %s713_s20, %s709_s19 }
   0x8   : > { %p27_p1 = scmp.eq.s32.totalorder %s26_s26, 0  ;;  %p37_p2 = scmp.eq.s32.totalorder %s717_s21, 0 }
   0x9   : > { %p42_p3 = scmp.ne.s32.totalorder %s709_s19, %s705_s18  ;;  %p43_p4 = scmp.eq.s32.totalorder %s778_s22, 0 }
   0xa   : > { %s794_s27 = scalar_select %p27_p1, %s713_s20, %s29_s25  }
   0xb   : > { %p796_p5 = por %p37_p2, %p36_p0  ;;  %p800_p6 = por %p43_p4, %p42_p3 }
   0xc   : > { %p108_p7 = scmp.eq.s32.totalorder %s778_s22, 1  ;;  %p114_p8 = scmp.eq.s32.totalorder %s545_s23, 1 }
   0xd   : > { %s950_s29 = scalar_select %p800_p6, 1, 0 }
   0xe   : > { %p579_p10 = scmp.lt.s32.totalorder %s717_s21, 2  ;;  %p807_p11 = por %p108_p7, %p36_p0 }
   0xf   : > { %p811_p12 = por %p114_p8, %p42_p3  ;;  %s192_s7 = sand.u32 1, %s713_s20  }
  0x10   : > { %s951_s30 = scalar_select %p807_p11, 1, 0 }
  0x11   : > { %s952_s6 = scalar_select %p811_p12, 1, 0 }
  0x12   : > { %s549_s8 = sshll.u32 %s717_s21, 7  ;;  %s548_s9 = sshll.u32 %s192_s7, 3 }
  0x13   : > { %s820_s12 = scalar_lea.hbm %s941_s0, %s549_s8  ;;  %s196_s13 = scalar_lea.vmem [#allocation2], %s548_s9 }
  0x14   : > { %s203_s14 = sshll.u32 %s196_s13, 4  ;;  %p824_p13 = pnand %p579_p10, %p796_p5  ;;  %s828_s14 = int_to_ptr.vmem [resolvable:$true] %s203_s14 }
  0x15   : > { %s193_s16 = scalar_lea.sflag [#allocation3], %s192_s7  ;;  %s625_s17 = scalar_lea.hbm %s820_s12, 128 }
  0x16   : > { %p626_p2 = scmp.ne.s32.totalorder %s820_s12, %s625_s17  ;;  %p627_p3 = pneg %p824_p13 }
  0x17   : > { %s630_s26 = scalar_lea.hbm %s941_s0, 256  ;;  %p631_p5 = scmp.lt.s32.totalorder %s820_s12, %s941_s0 }
  0x18   : > { %p628_p4 = pnand %p627_p3, %p626_p2  ;;  %p632_p8 = scmp.lt.s32.totalorder %s630_s26, %s625_s17 }
  0x1a   : > { %p629_p7 = pneg %p628_p4  ;;  %p633_p10 = por %p632_p8, %p631_p5 }
  0x1c   : > { %p634_p9 = pnand %p633_p10, %p629_p7 }
  0x1e   : > { %637 = shalt.err (!%p634_p9)
}
  0x1f   : > { %s638_s7 = scalar_lea.vmem %s828_s14, 128  ;;  %s719_s9 = smov [#allocation2]  }
  0x20   : > { %p639_p0 = scmp.ne.s32.totalorder %s828_s14, %s638_s7  ;;  %s643_s10 = sshll.u32 %s719_s9, 4  ;;  %s644_s10 = int_to_ptr.vmem [resolvable:$false] %s643_s10 }
  0x21   : > { %s645_s11 = scalar_lea.vmem %s644_s10, 256  ;;  %p646_p4 = scmp.lt.s32.totalorder %s828_s14, %s644_s10 }
  0x22   : > { %p641_p1 = pnand %p639_p0, %p627_p3  ;;  %p647_p12 = scmp.lt.s32.totalorder %s645_s11, %s638_s7 }
  0x24   : > { %p642_p2 = pneg %p641_p1  ;;  %p648_p11 = por %p647_p12, %p646_p4 }
  0x26   : > { %p649_p6 = pnand %p648_p11, %p642_p2 }
  0x28   : > { %652 = shalt.err (!%p649_p6)
}
  0x29   : > { %574 = dma.hbm_to_vmem [thread:$0]  (!%p824_p13), %s820_s12, 128, %s828_s14, %s193_s16  }
  0x2a   : > { %p954_p9 = scmp.lt.s32.totalorder %s717_s21, 3  ;;  %p955_p7 = scmp.ge.s32.totalorder %s717_s21, 1 }
  0x2c   : > { %p209_p0 = pnand %p955_p7, %p954_p9 }
  0x2d   : > { %s855_s13 = sand.u32 (!%p209_p0), 1, %s709_s19   ;;  %p956_p6 = scmp.ne.s32.totalorder (!%p209_p0), %s950_s29, 0 }
  0x2e   : > { %212 = sbr.rel (%p209_p0) target bundleno = 316 (0x13c), region = 32  ;;  %s551_s17 = sshll.u32 (!%p209_p0), %s855_s13, 3 }
  0x2f   : > { %s215_s23 = scalar_lea.sflag (!%p209_p0), [#allocation3], %s855_s13  ;;  %s218_s15 = scalar_lea.vmem (!%p209_p0), [#allocation2], %s551_s17 }
  0x33   : > { %696 = dma.done.wait (%p956_p6), %s215_s23, 128  }
  0x34   : > { %698 = vsyncadd (%p956_p6), %s215_s23, 4294967168  ;;  %v865_v0 = vld [vmem:[%s218_s15] sm:$0xff]  ;;  %v720_v16 = vmov 683565275   ;;  %v721_v18 = vmov 2475754826  }
  0x35   : > { %v553_v1 = vld [vmem:[%s942_s1] ss:$0 sm:$0xff]  ;;  %v722_v20 = vmov 2131351028   ;;  %v723_v22 = vmov 2102212464  }
  0x36   : > { %v554_v2 = vld [vmem:[%s943_s2] ss:$0 sm:$0xff]  ;;  %v266_v3 = vmul.f32 %v553_v1, %v865_v0  ;;  %v724_v24 = vmov 920167782   ;;  %v725_v31 = vmov 1326507024  }
  0x37   : > { %s560_s29 = sshll.u32 %s778_s22, 7  ;;  %s240_s26 = scalar_lea.vmem [#allocation5], %s551_s17 }
  0x38   : > { %v874_v4 = vadd.f32 %v554_v2, %v266_v3  ;;  %s431_s28 = sshll.u32 %s240_s26, 4  ;;  %s429_s9 = scalar_lea.hbm %s944_s3, %s560_s29  ;;  %s432_s28 = int_to_ptr.vmem [resolvable:$true] %s431_s28 }
  0x39   : > { %s412_s10 = scalar_lea.sflag [#allocation4], %s855_s13  ;;  %s653_s11 = scalar_lea.vmem %s432_s28, 128 }
  0x3a   : > { %v277_v5 = vand.u32 2139095040, %v874_v4  ;;  %v274_v7 = vand.u32 2147483647, %v874_v4  ;;  %vm276_vm7 = vcmp.lt.s32.totalorder %v874_v4, 0  ;;  %vm366_vm12 = vweird.f32 %v874_v4  ;;  %p654_p11 = scmp.ne.s32.totalorder %s432_s28, %s653_s11  ;;  %p957_p12 = scmp.ne.s32.totalorder %s951_s30, 0 }
  0x3b   : > { %s726_s23 = smov [#allocation5]  }
  0x3c   : > { %v278_v6 = vshrl.u32 %v277_v5, 23  ;;  %v281_v10 = vand.u32 8388607, %v274_v7  ;;  %vm275_vm8 = vcmp.le.f32.partialorder %v274_v7, 0.7853982  ;;  %p655_p13 = pnand %p654_p11, %p957_p12  ;;  %s657_s15 = sshll.u32 %s726_s23, 4  ;;  %s658_s15 = int_to_ptr.vmem [resolvable:$false] %s657_s15 }
  0x3d   : > { %s659_s12 = scalar_lea.vmem %s658_s15, 256  ;;  %p660_p3 = scmp.lt.s32.totalorder %s432_s28, %s658_s15 }
  0x3e   : > { %v555_v8 = vadd.s32 4294967169, %v278_v6  ;;  %v282_v13 = vor.u32 8388608, %v281_v10  ;;  %p656_p1 = pneg %p655_p13  ;;  %p661_p5 = scmp.lt.s32.totalorder %s659_s12, %s653_s11 }
  0x40   : > { %v284_v9 = vadd.s32 1, %v555_v8  ;;  %v322_v33 = vshll.u32 %v282_v13, 8  ;;  %p662_p8 = por %p661_p5, %p660_p3 }
  0x42   : > { %vm285_vm0 = vcmp.gt.s32.totalorder %v284_v9, 0  ;;  %p663_p10 = pnand %p662_p8, %p656_p1 }
  0x43   : > { %v286_v11 = vsel %vm285_vm0, %v284_v9, 0 }
  0x44   : > { %v288_v12 = vand.u32 31, %v286_v11  ;;  %v287_v14 = vshrl.u32 %v286_v11, 5 }
  0x46   : > { %v289_v15 = vsub.s32 32, %v288_v12  ;;  %v291_v17 = vshll.u32 %v720_v16, %v288_v12  ;;  %v294_v19 = vshll.u32 %v721_v18, %v288_v12  ;;  %v297_v21 = vshll.u32 %v722_v20, %v288_v12 }
  0x47   : > { %v300_v23 = vshll.u32 %v723_v22, %v288_v12  ;;  %v303_v25 = vshll.u32 %v724_v24, %v288_v12  ;;  %vm306_vm1 = vcmp.lt.s32.totalorder %v287_v14, 1  ;;  %vm309_vm2 = vcmp.lt.s32.totalorder %v287_v14, 4 }
  0x48   : > { %v290_v26 = vshrl.u32 %v720_v16, %v289_v15  ;;  %v292_v27 = vshrl.u32 %v721_v18, %v289_v15  ;;  %v295_v28 = vshrl.u32 %v722_v20, %v289_v15  ;;  %v298_v29 = vshrl.u32 %v723_v22, %v289_v15 }
  0x49   : > { %v301_v30 = vshrl.u32 %v724_v24, %v289_v15  ;;  %v304_v32 = vshrl.u32 %v725_v31, %v289_v15  ;;  %vm307_vm3 = vcmp.lt.s32.totalorder %v287_v14, 2  ;;  %vm308_vm4 = vcmp.lt.s32.totalorder %v287_v14, 3 }
  0x4a   : > { %v293_v34 = vor.u32 %v292_v27, %v291_v17  ;;  %v296_v35 = vor.u32 %v295_v28, %v294_v19  ;;  %v299_v36 = vor.u32 %v298_v29, %v297_v21 }
  0x4b   : > { %v302_v37 = vor.u32 %v301_v30, %v300_v23  ;;  %v305_v38 = vor.u32 %v304_v32, %v303_v25 }
  0x4c   : > { %v310_v39 = vsel %vm306_vm1, %v290_v26, %v293_v34  ;;  %v311_v40 = vsel %vm309_vm2, %v299_v36, 2102212464  ;;  %v314_v41 = vsel %vm306_vm1, %v293_v34, %v296_v35  ;;  %v318_v42 = vsel %vm306_vm1, %v296_v35, %v299_v36 }
  0x4d   : > { %v312_v43 = vsel %vm308_vm4, %v296_v35, %v311_v40  ;;  %v315_v44 = vsel %vm309_vm2, %v302_v37, 920167782  ;;  %v319_v45 = vsel %vm309_vm2, %v305_v38, 1326507024 }
  0x4e   : > { %v316_v46 = vsel %vm308_vm4, %v299_v36, %v315_v44  ;;  %v320_v47 = vsel %vm308_vm4, %v302_v37, %v319_v45  ;;  %v313_v48 = vsel %vm307_vm3, %v310_v39, %v312_v43 }
  0x4f   : > { %v317_v49 = vsel %vm307_vm3, %v314_v41, %v316_v46  ;;  %v321_v50 = vsel %vm307_vm3, %v318_v42, %v320_v47  ;;  %v329_v55 = vmul.u32 %v322_v33, %v313_v48 }
  0x50   : > { %v880_v51 = vmul.u32.u64.low %v322_v33, %v321_v50  ;;  %v881_v52 = vmul.u32.u64.high %v322_v33, %v321_v50, %v880_v51  ;;  %v883_v53 = vmul.u32.u64.low %v322_v33, %v317_v49  ;;  %v884_v54 = vmul.u32.u64.high %v322_v33, %v317_v49, %v883_v53 }
  0x52   : > { %vm331_vm5 = vc.u32 %v881_v52, %v883_v53  ;;  %v332_v56 = vadd.s32 1, %v884_v54  ;;  %v330_v5 = vadd.s32 %v883_v53, %v881_v52 }
  0x54   : > { %v333_v57 = vsel %vm331_vm5, %v332_v56, %v884_v54 }
  0x55   : > { %v334_v58 = vadd.s32 %v333_v57, %v329_v55 }
  0x57   : > { %v335_v59 = vadd.s32 536870912, %v334_v58 }
  0x59   : > { %v336_v60 = vshrl.u32 %v335_v59, 30 }
  0x5b   : > { %v337_v61 = vshll.u32 %v336_v60, 30  ;;  %v360_v21 = vsub.s32 4, %v336_v60 }
  0x5d   : > { %v338_v62 = vsub.s32 %v334_v58, %v337_v61  ;;  %v361_v23 = vsel %vm276_vm7, %v360_v21, %v336_v60 }
  0x5e   : > { %v363_v24 = vsel %vm275_vm8, 0, %v361_v23 }
  0x5f   : > { %v340_v63 = vsub.s32 0, %v338_v62  ;;  %v367_v25 = vand.u32 3, %v363_v24 }
  0x61   : > { %v556_v1 = vmin.u32 %v340_v63, %v338_v62  ;;  %vm372_vm9 = vcmp.eq.s32.totalorder %v367_v25, 2  ;;  %vm369_vm10 = vcmp.eq.s32.totalorder %v367_v25, 0  ;;  %vm368_vm11 = vcmp.lt.s32.totalorder %v367_v25, 2 }
  0x63   : > { %v342_v2 = vclz %v556_v1 }
  0x65   : > { %v557_v3 = vadd.s32 4294967294, %v342_v2 }
  0x67   : > { %vm558_vm6 = vcmp.lt.s32.totalorder %v557_v3, 0 }
  0x68   : > { %v345_v6 = vsel %vm558_vm6, 0, %v557_v3 }
  0x69   : > { %v346_v8 = vsub.s32 32, %v345_v6  ;;  %v347_v9 = vshll.u32 %v338_v62, %v345_v6  ;;  %v350_v10 = vsub.s32 4294967266, %v345_v6 }
  0x6b   : > { %v348_v11 = vshrl.u32 %v330_v5, %v346_v8  ;;  %v351_v12 = vadd.s32 127, %v350_v10 }
  0x6d   : > { %v349_v13 = vor.u32 %v348_v11, %v347_v9  ;;  %v352_v14 = vshll.u32 %v351_v12, 23 }
  0x6f   : > { %v353_v15 = vor.u32 4788187, %v352_v14  ;;  %v356_v16 = vcvt.s32.f32 %v349_v13 }
  0x71   : > { %v354_v17 = vand.u32 2147483647, %v353_v15 }
  0x73   : > { %v357_v18 = vmul.f32 %v356_v16, %v354_v17 }
  0x75   : > { %v358_v19 = vxor.u32 2147483648, %v357_v18 }
  0x77   : > { %v359_v20 = vsel %vm276_vm7, %v358_v19, %v357_v18 }
  0x78   : > { %v362_v22 = vsel %vm275_vm8, %v874_v4, %v359_v20 }
  0x79   : > { %619 = vcosq.f32 %v362_v22 }
  0x7a   : > { %621 = vsinq.f32 %v362_v22 }
  0x86   : > { %v620_v26 = vpop.eup %619 }
  0x87   : > { %v622_v27 = vpop.eup %621  ;;  %v373_v28 = vxor.u32 2147483648, %v620_v26 }
  0x88   : > { %v370_v29 = vxor.u32 2147483648, %v622_v27 }
  0x89   : > { %v374_v7 = vsel %vm372_vm9, %v373_v28, %v622_v27 }
  0x8a   : > { %v371_v30 = vsel %vm369_vm10, %v620_v26, %v370_v29 }
  0x8b   : > { %v375_v31 = vsel %vm368_vm11, %v371_v30, %v374_v7 }
  0x8c   : > { %v376_v32 = vsel %vm366_vm12, nan, %v375_v31 }
  0x8d   : > { %v377_v33 = vmul.f32 0.5, %v376_v32 }
  0x8f   : > { %v378_v34 = vadd.f32 0.5, %v377_v33 }
  0x91   : > { %v379_v35 = vadd.f32 1e-09, %v378_v34  ;;  %v409_v4 = vmul.f32 %v378_v34, %v865_v0 }
  0x93   : > { %623 = vlog2.f32 %v379_v35  ;;  %410 = vst [vmem:[%s240_s26] sm:$0xff] %v409_v4 }
  0xa0   : > { %v624_v36 = vpop.eup %623 }
  0xa1   : > { %v381_v37 = vmul.f32 0.6931472, %v624_v36 }
  0xa3   : > { %v383_v38 = vmul.f32 1.442695, %v381_v37 }
  0xa5   : > { %v384_v39 = vsub.f32 0.0, %v383_v38 }
  0xa7   : > { %v385_v40 = vmul.f32 %v384_v39, %v378_v34 }
  0xa9   : > { %386 = vadd.xlane.f32.xlu0 %v385_v40 }
  0xad   : > { %389 = vadd.xlane.f32.xlu0 %v378_v34 }
  0xae   : > { %666 = shalt.err (!%p663_p10)
}
  0xaf   : > { %s667_s17 = scalar_lea.hbm %s429_s9, 128  ;;  %s671_s16 = scalar_lea.hbm %s944_s3, 256 }
  0xb0   : > { %p668_p2 = scmp.ne.s32.totalorder %s429_s9, %s667_s17  ;;  %p672_p7 = scmp.lt.s32.totalorder %s429_s9, %s944_s3 }
  0xb1   : > { %p673_p0 = scmp.lt.s32.totalorder %s671_s16, %s667_s17 }
  0xb2   : > { %p669_p4 = pnand %p668_p2, %p957_p12 }
  0xb3   : > { %p674_p6 = por %p673_p0, %p672_p7 }
  0xb4   : > { %p670_p9 = pneg %p669_p4 }
  0xb6   : > { %p675_p11 = pnand %p674_p6, %p670_p9 }
  0xb8   : > { %678 = shalt.err (!%p675_p11)
}
  0xb9   : > { %569 = dma.vmem_to_hbm [thread:$0]  (%p957_p12), %s432_s28, 128, %s429_s9, %s412_s10   ;;  %v393_v0 = vlaneseq  ;;  %vm400_vm13 = vcmask 57344  }
  0xba   : > { %p251_p13 = scmp.lt.s32.totalorder %s778_s22, 1 }
  0xbb   : > { %v394_v41 = vand.u32 127, %v393_v0  ;;  %v396_v42 = vshrl.u32 %v393_v0, 7 }
  0xbc   : > { %s965_s22 = smov (!%p251_p13, %s778_s22), 1 }
  0xbd   : > { %v397_v43 = vsub.s32 %v394_v41, %v396_v42  ;;  %s253_s7 = scalar_lea.vmem %s945_s4, %s965_s22  ;;  %s256_s28 = scalar_lea.vmem %s946_s5, %s965_s22 }
 0x132   : > { %v387_v44 = vpop.xlane.xlu0 %386 }
 0x133   : > { %v388_v45 = vmul.f32 0.0078125, %v387_v44 }
 0x135   : > { %v398_v46 = vrot.slane %v388_v45, %v397_v43 }
 0x136   : > { %v390_v47 = vpop.xlane.xlu0 %389 }
 0x137   : > { %401 = vst.msk [vmem:[%s253_s7] sm:$0x1] %vm400_vm13, %v398_v46  ;;  %v391_v48 = vmul.f32 0.0078125, %v390_v47 }
 0x139   : > { %v406_v49 = vrot.slane %v391_v48, %v397_v43 }
 0x13b   : > { %408 = vst.msk [vmem:[%s256_s28] sm:$0x1] %vm400_vm13, %v406_v49 }
 0x13c PF: > { %s449_s9 = sand.u32 1, %s705_s18   ;;  %p958_p12 = scmp.ne.s32.totalorder %s952_s6, 0 }
 0x13d   : > { %p959_p1 = scmp.ge.s32.totalorder %s717_s21, 2  ;;  %s450_s10 = scalar_lea.sflag [#allocation4], %s449_s9 }
 0x13f   : > { %p576_p3 = pnand %p959_p1, %p958_p12 }
 0x141   : > { %p577_p5 = pneg %p576_p3 }
 0x143   : > { %700 = dma.done.wait (%p577_p5), %s450_s10, 128  }
 0x144   : > { %702 = vsyncadd (%p577_p5), %s450_s10, 4294967168  ;;  %p19_p8 = scmp.ge.s32.totalorder %s782_s24, 4   ;;  %s960_s18 = smov %s709_s19 }
 0x145   : > { %s961_s19 = smov %s713_s20  ;;  %s962_s20 = smov %s794_s27 }
 0x146   : > { %s963_s21 = smov %s782_s24  ;;  %21 = sbr.rel (!%p19_p8) target bundleno = 5 (0x5), region = 101 }
 0x14b   :  { %467 = vsyncpa [#allocation3], 1 }
 0x14c   :  { %469 = vsyncpa [#allocation3 + $0x1], 1 }
 0x14d   :  { %470 = vsyncpa [#allocation4], 1 }
 0x14e   :  { %472 = vsyncpa [#allocation4 + $0x1], 1 }

</bundles_post_ra>
